<compile_context>
chip_gen: v6e
topology: v6e:2x2x1
jax: 0.10.0
libtpu: 0.0.40
codegen_flags: <defaults>
</compile_context>

<pallas_src>
import functools

import jax
import jax.numpy as jnp
from jax import lax
from jax.experimental import pallas as pl
from jax.experimental.pallas import tpu as pltpu


def _mha_kernel(q_ref, k_ref, v_ref,
                wq_ref, wk_ref, wv_ref, bqkv_ref, wo_ref, bo_ref,
                out_ref,
                qp_scr, m_scr, l_scr, acc_scr,
                *, k_heads, d_h):
    """Grid: (q_tile ["parallel"], kv_tile ["arbitrary"]).
    One step processes a (tq x tk) attention block for ALL heads with an
    online (flash-style) softmax carried in VMEM scratch."""
    ki = pl.program_id(1)
    inv_norm = jnp.float32(1.0 / (d_h ** 0.5))

    # ---- first kv tile for this q tile: project Q for all heads at once and
    #      reset the online-softmax state -----------------------------------
    @pl.when(ki == 0)
    def _():
        qp = jnp.dot(q_ref[...], wq_ref[...],
                     preferred_element_type=jnp.float32) + bqkv_ref[0:1, :]
        for h in range(k_heads):
            qp_scr[h] = qp[:, h * d_h:(h + 1) * d_h].astype(jnp.bfloat16)
        m_scr[...] = jnp.full_like(m_scr, -1e30)
        l_scr[...] = jnp.zeros_like(l_scr)
        acc_scr[...] = jnp.zeros_like(acc_scr)

    # ---- project this K/V tile for all heads (one lane-dense matmul each) --
    kp = (jnp.dot(k_ref[...], wk_ref[...],
                  preferred_element_type=jnp.float32)
          + bqkv_ref[1:2, :]).astype(jnp.bfloat16)
    vp = (jnp.dot(v_ref[...], wv_ref[...],
                  preferred_element_type=jnp.float32)
          + bqkv_ref[2:3, :]).astype(jnp.bfloat16)

    # ---- online softmax per head (static loop; value-level slices only) ----
    for h in range(k_heads):
        sl = slice(h * d_h, (h + 1) * d_h)
        # scores: transpose absorbed into the matmul (contract last dims)
        s = lax.dot_general(
            qp_scr[h], kp[:, sl],
            dimension_numbers=(((1,), (1,)), ((), ())),
            preferred_element_type=jnp.float32) * inv_norm          # [tq, tk]
        m_prev = m_scr[h]                                           # [tq, 1]
        m_new = jnp.maximum(m_prev, jnp.max(s, axis=-1, keepdims=True))
        alpha = jnp.exp(m_prev - m_new)
        p = jnp.exp(s - m_new)
        l_scr[h] = alpha * l_scr[h] + jnp.sum(p, axis=-1, keepdims=True)
        acc_scr[h] = alpha * acc_scr[h] + jnp.dot(
            p.astype(jnp.bfloat16), vp[:, sl],
            preferred_element_type=jnp.float32)
        m_scr[h] = m_new

    # ---- last kv tile: normalize, fuse the mixing linear, store ------------
    @pl.when(ki == pl.num_programs(1) - 1)
    def _():
        parts = []
        for h in range(k_heads):
            inv_l = pl.reciprocal(l_scr[h], approx=True)            # EUP slot
            parts.append((acc_scr[h] * inv_l).astype(jnp.bfloat16))
        y_cat = jnp.concatenate(parts, axis=-1)                     # [tq, k*d_h]
        out_ref[...] = jnp.dot(y_cat, wo_ref[...],
                               preferred_element_type=jnp.float32) + bo_ref[...]


def _largest_tile(n, target):
    """Largest multiple-of-8 divisor of n that is <= target (or n itself)."""
    if n <= target:
        return n
    best = None
    t = 8
    while t <= target:
        if n % t == 0:
            best = t
        t += 8
    return best if best is not None else n


def multi_head_attention(Q, K, V, params, *, tq_target=256, tk_target=512):
    """Q:[n_q,d_q] K:[n_k,d_k] V:[n_k,d_v] -> Y:[n_q,d_h] (float32)."""
    wq, bq, wk, bk, wv, bv, wo, bo = params
    d_q, kd = wq.shape
    d_k = wk.shape[0]
    d_v = wv.shape[0]
    d_h = wo.shape[1]
    k_heads = kd // d_h
    n_q, n_k = Q.shape[0], K.shape[0]

    tq = _largest_tile(n_q, tq_target)
    tk = _largest_tile(n_k, tk_target)
    grid = (n_q // tq, n_k // tk)

    # bf16 MXU operands (accumulation stays f32 in-kernel); biases stay f32
    # and are packed into one lane-dense (3, k*d_h) array.
    bf = jnp.bfloat16
    b_qkv = jnp.stack([bq, bk, bv], axis=0).astype(jnp.float32)     # [3, k*d_h]
    bo2 = bo.reshape(1, d_h).astype(jnp.float32)

    kernel = functools.partial(_mha_kernel, k_heads=k_heads, d_h=d_h)

    return pl.pallas_call(
        kernel,
        out_shape=jax.ShapeDtypeStruct((n_q, d_h), jnp.float32),
        grid_spec=pltpu.PrefetchScalarGridSpec(
            num_scalar_prefetch=0,
            grid=grid,
            in_specs=[
                pl.BlockSpec((tq, d_q), lambda qi, ki: (qi, 0)),    # Q tile
                pl.BlockSpec((tk, d_k), lambda qi, ki: (ki, 0)),    # K tile
                pl.BlockSpec((tk, d_v), lambda qi, ki: (ki, 0)),    # V tile
                pl.BlockSpec((d_q, kd), lambda qi, ki: (0, 0)),     # Wq (all heads)
                pl.BlockSpec((d_k, kd), lambda qi, ki: (0, 0)),     # Wk (all heads)
                pl.BlockSpec((d_v, kd), lambda qi, ki: (0, 0)),     # Wv (all heads)
                pl.BlockSpec((3, kd), lambda qi, ki: (0, 0)),       # packed biases
                pl.BlockSpec((kd, d_h), lambda qi, ki: (0, 0)),     # Wo
                pl.BlockSpec((1, d_h), lambda qi, ki: (0, 0)),      # bo
            ],
            out_specs=pl.BlockSpec((tq, d_h), lambda qi, ki: (qi, 0)),
            scratch_shapes=[
                pltpu.VMEM((k_heads, tq, d_h), jnp.bfloat16),   # projected Q
                pltpu.VMEM((k_heads, tq, 1), jnp.float32),      # running max
                pltpu.VMEM((k_heads, tq, 1), jnp.float32),      # running sum
                pltpu.VMEM((k_heads, tq, d_h), jnp.float32),    # acc (pre-Wo)
            ],
        ),
        compiler_params=pltpu.CompilerParams(
            dimension_semantics=("parallel", "arbitrary")),
    )(Q.astype(bf), K.astype(bf), V.astype(bf),
      wq.astype(bf), wk.astype(bf), wv.astype(bf),
      b_qkv, wo.astype(bf), bo2)


def init_params(key, k_heads, d_q, d_k, d_v, d_h):
    """torch.nn.Linear-style init (uniform +-1/sqrt(fan_in)). Weights are
    stored pre-transposed [in, out] with heads concatenated along the output
    dim; final mixing linear stored as [k*d_h, d_h]."""
    keys = jax.random.split(key, 8)
    kd = k_heads * d_h

    def u(kk, fan_in, shape):
        b = 1.0 / jnp.sqrt(jnp.float32(fan_in))
        return jax.random.uniform(kk, shape, jnp.float32, -b, b)

    wq = u(keys[0], d_q, (d_q, kd)); bq = u(keys[1], d_q, (kd,))
    wk = u(keys[2], d_k, (d_k, kd)); bk = u(keys[3], d_k, (kd,))
    wv = u(keys[4], d_v, (d_v, kd)); bv = u(keys[5], d_v, (kd,))
    wo = u(keys[6], kd, (kd, d_h)); bo = u(keys[7], kd, (d_h,))
    return (wq, bq, wk, bk, wv, bv, wo, bo)


def reference_mha(Q, K, V, params, k_heads, d_h):
    """Pure-JAX f32 reference of the PyTorch forward."""
    wq, bq, wk, bk, wv, bv, wo, bo = params
    qp = Q @ wq + bq
    kp = K @ wk + bk
    vp = V @ wv + bv
    outs = []
    for h in range(k_heads):
        sl = slice(h * d_h, (h + 1) * d_h)
        s = qp[:, sl] @ kp[:, sl].T / jnp.sqrt(jnp.float32(d_h))
        a = jax.nn.softmax(s, axis=-1)
        outs.append(a @ vp[:, sl])
    return jnp.concatenate(outs, axis=-1) @ wo + bo


if __name__ == "__main__":
    k_heads, d_q, d_k, d_v, d_h = 2, 16, 16, 16, 32
    n_q, n_k = 8, 8

    root = jax.random.PRNGKey(0)
    kq, kk, kv, kp = jax.random.split(root, 4)
    Q = jax.random.normal(kq, (n_q, d_q), jnp.float32)
    K = jax.random.normal(kk, (n_k, d_k), jnp.float32)
    V = jax.random.normal(kv, (n_k, d_v), jnp.float32)
    params = init_params(kp, k_heads, d_q, d_k, d_v, d_h)

    y = multi_head_attention(Q, K, V, params)
    jax.block_until_ready(y)

    y_ref = reference_mha(Q, K, V, params, k_heads, d_h)
    assert y.shape == (n_q, d_h)
    # bf16 MXU operands + approx reciprocal -> looser tolerance than pure f32.
    assert jnp.allclose(y, y_ref, atol=5e-2, rtol=5e-2), "mismatch vs reference"
    print("KERNEL_OK")
</pallas_src>

<mosaic_0001>
module attributes {stable_mosaic.version = 11 : i64} {
  func.func @_mha_kernel(%arg0: i32, %arg1: i32, %arg2: memref<8x16xbf16, #tpu.memory_space<vmem>>, %arg3: memref<8x16xbf16, #tpu.memory_space<vmem>>, %arg4: memref<8x16xbf16, #tpu.memory_space<vmem>>, %arg5: memref<16x64xbf16, #tpu.memory_space<vmem>>, %arg6: memref<16x64xbf16, #tpu.memory_space<vmem>>, %arg7: memref<16x64xbf16, #tpu.memory_space<vmem>>, %arg8: memref<3x64xf32, #tpu.memory_space<vmem>>, %arg9: memref<64x32xbf16, #tpu.memory_space<vmem>>, %arg10: memref<1x32xf32, #tpu.memory_space<vmem>>, %arg11: memref<8x32xf32, #tpu.memory_space<vmem>>, %arg12: memref<2x8x32xbf16, #tpu.memory_space<vmem>>, %arg13: memref<2x8x1xf32, #tpu.memory_space<vmem>>, %arg14: memref<2x8x1xf32, #tpu.memory_space<vmem>>, %arg15: memref<2x8x32xf32, #tpu.memory_space<vmem>>) attributes {dimension_semantics = [#tpu.dimension_semantics<parallel>, #tpu.dimension_semantics<arbitrary>], iteration_bounds = array<i64: 1, 1>, scalar_prefetch = 0 : i64, scratch_operands = 4 : i64, tpu.core_type = #tpu.core_type<tc>, window_params = [{transform_indices = @transform_0, window_bounds = array<i64: 8, 16>}, {transform_indices = @transform_1, window_bounds = array<i64: 8, 16>}, {transform_indices = @transform_2, window_bounds = array<i64: 8, 16>}, {pipeline_mode = #tpu.pipeline_mode<synchronous>, transform_indices = @transform_3, window_bounds = array<i64: 16, 64>}, {pipeline_mode = #tpu.pipeline_mode<synchronous>, transform_indices = @transform_4, window_bounds = array<i64: 16, 64>}, {pipeline_mode = #tpu.pipeline_mode<synchronous>, transform_indices = @transform_5, window_bounds = array<i64: 16, 64>}, {pipeline_mode = #tpu.pipeline_mode<synchronous>, transform_indices = @transform_6, window_bounds = array<i64: 3, 64>}, {pipeline_mode = #tpu.pipeline_mode<synchronous>, transform_indices = @transform_7, window_bounds = array<i64: 64, 32>}, {pipeline_mode = #tpu.pipeline_mode<synchronous>, transform_indices = @transform_8, window_bounds = array<i64: 1, 32>}, {transform_indices = @transform_9, window_bounds = array<i64: 8, 32>}]} {
    %c0_i32 = arith.constant 0 : i32
    %0 = arith.cmpi eq, %arg1, %c0_i32 : i32
    %1 = arith.extui %0 : i1 to i32
    %c0_i32_0 = arith.constant 0 : i32
    %2 = arith.cmpi ne, %1, %c0_i32_0 : i32
    scf.if %2 {
      %c0_65 = arith.constant 0 : index
      %c0_66 = arith.constant 0 : index
      %98 = vector.load %arg2[%c0_65, %c0_66] : memref<8x16xbf16, #tpu.memory_space<vmem>>, vector<8x16xbf16>
      %c0_67 = arith.constant 0 : index
      %c0_68 = arith.constant 0 : index
      %99 = vector.load %arg5[%c0_67, %c0_68] : memref<16x64xbf16, #tpu.memory_space<vmem>>, vector<16x64xbf16>
      %cst_69 = arith.constant dense<0.000000e+00> : vector<8x64xf32>
      %100 = tpu.matmul %98, %99, %cst_69 {dimension_numbers = #tpu.dot_dimension_numbers<[1], [0], [0], [1], [0, 0, 1, 1], [], []>} : vector<8x16xbf16>, vector<16x64xbf16>, vector<8x64xf32> -> vector<8x64xf32>
      %c0_70 = arith.constant 0 : index
      %c0_71 = arith.constant 0 : index
      %101 = vector.load %arg8[%c0_70, %c0_71] : memref<3x64xf32, #tpu.memory_space<vmem>>, vector<1x64xf32>
      %102 = vector.broadcast %101 : vector<1x64xf32> to vector<8x64xf32>
      %103 = arith.addf %100, %102 : vector<8x64xf32>
      %104 = vector.extract_strided_slice %103 {offsets = [0, 0], sizes = [8, 32], strides = [1, 1]} : vector<8x64xf32> to vector<8x32xf32>
      %105 = arith.truncf %104 : vector<8x32xf32> to vector<8x32xbf16>
      %c0_72 = arith.constant 0 : index
      %c0_73 = arith.constant 0 : index
      %c0_74 = arith.constant 0 : index
      %106 = vector.load %arg12[%c0_72, %c0_73, %c0_74] : memref<2x8x32xbf16, #tpu.memory_space<vmem>>, vector<1x8x32xbf16>
      %107 = vector.shape_cast %106 : vector<1x8x32xbf16> to vector<8x32xbf16>
      %108 = vector.shape_cast %105 : vector<8x32xbf16> to vector<1x8x32xbf16>
      tpu.vector_store %arg12[%c0_72, %c0_73, %c0_74], %108 {strides = array<i32>} : memref<2x8x32xbf16, #tpu.memory_space<vmem>>, vector<1x8x32xbf16>,
      %109 = vector.extract_strided_slice %103 {offsets = [0, 32], sizes = [8, 32], strides = [1, 1]} : vector<8x64xf32> to vector<8x32xf32>
      %110 = arith.truncf %109 : vector<8x32xf32> to vector<8x32xbf16>
      %c1_75 = arith.constant 1 : index
      %c0_76 = arith.constant 0 : index
      %c0_77 = arith.constant 0 : index
      %111 = vector.load %arg12[%c1_75, %c0_76, %c0_77] : memref<2x8x32xbf16, #tpu.memory_space<vmem>>, vector<1x8x32xbf16>
      %112 = vector.shape_cast %111 : vector<1x8x32xbf16> to vector<8x32xbf16>
      %113 = vector.shape_cast %110 : vector<8x32xbf16> to vector<1x8x32xbf16>
      tpu.vector_store %arg12[%c1_75, %c0_76, %c0_77], %113 {strides = array<i32>} : memref<2x8x32xbf16, #tpu.memory_space<vmem>>, vector<1x8x32xbf16>,
      %cst_78 = arith.constant -1.000000e+30 : f32
      %114 = vector.broadcast %cst_78 : f32 to vector<2x8x1xf32>
      %c0_79 = arith.constant 0 : index
      %c0_80 = arith.constant 0 : index
      %c0_81 = arith.constant 0 : index
      %115 = vector.load %arg13[%c0_79, %c0_80, %c0_81] : memref<2x8x1xf32, #tpu.memory_space<vmem>>, vector<2x8x1xf32>
      tpu.vector_store %arg13[%c0_79, %c0_80, %c0_81], %114 {strides = array<i32>} : memref<2x8x1xf32, #tpu.memory_space<vmem>>, vector<2x8x1xf32>,
      %cst_82 = arith.constant 0.000000e+00 : f32
      %116 = vector.broadcast %cst_82 : f32 to vector<2x8x1xf32>
      %c0_83 = arith.constant 0 : index
      %c0_84 = arith.constant 0 : index
      %c0_85 = arith.constant 0 : index
      %117 = vector.load %arg14[%c0_83, %c0_84, %c0_85] : memref<2x8x1xf32, #tpu.memory_space<vmem>>, vector<2x8x1xf32>
      tpu.vector_store %arg14[%c0_83, %c0_84, %c0_85], %116 {strides = array<i32>} : memref<2x8x1xf32, #tpu.memory_space<vmem>>, vector<2x8x1xf32>,
      %cst_86 = arith.constant 0.000000e+00 : f32
      %118 = vector.broadcast %cst_86 : f32 to vector<2x8x32xf32>
      %c0_87 = arith.constant 0 : index
      %c0_88 = arith.constant 0 : index
      %c0_89 = arith.constant 0 : index
      %119 = vector.load %arg15[%c0_87, %c0_88, %c0_89] : memref<2x8x32xf32, #tpu.memory_space<vmem>>, vector<2x8x32xf32>
      tpu.vector_store %arg15[%c0_87, %c0_88, %c0_89], %118 {strides = array<i32>} : memref<2x8x32xf32, #tpu.memory_space<vmem>>, vector<2x8x32xf32>,
    } else {
    }
    %c0 = arith.constant 0 : index
    %c0_1 = arith.constant 0 : index
    %3 = vector.load %arg3[%c0, %c0_1] : memref<8x16xbf16, #tpu.memory_space<vmem>>, vector<8x16xbf16>
    %c0_2 = arith.constant 0 : index
    %c0_3 = arith.constant 0 : index
    %4 = vector.load %arg6[%c0_2, %c0_3] : memref<16x64xbf16, #tpu.memory_space<vmem>>, vector<16x64xbf16>
    %cst = arith.constant dense<0.000000e+00> : vector<8x64xf32>
    %5 = tpu.matmul %3, %4, %cst {dimension_numbers = #tpu.dot_dimension_numbers<[1], [0], [0], [1], [0, 0, 1, 1], [], []>} : vector<8x16xbf16>, vector<16x64xbf16>, vector<8x64xf32> -> vector<8x64xf32>
    %c1 = arith.constant 1 : index
    %c0_4 = arith.constant 0 : index
    %6 = vector.load %arg8[%c1, %c0_4] : memref<3x64xf32, #tpu.memory_space<vmem>>, vector<1x64xf32>
    %7 = vector.broadcast %6 : vector<1x64xf32> to vector<8x64xf32>
    %8 = arith.addf %5, %7 : vector<8x64xf32>
    %9 = arith.truncf %8 : vector<8x64xf32> to vector<8x64xbf16>
    %c0_5 = arith.constant 0 : index
    %c0_6 = arith.constant 0 : index
    %10 = vector.load %arg4[%c0_5, %c0_6] : memref<8x16xbf16, #tpu.memory_space<vmem>>, vector<8x16xbf16>
    %c0_7 = arith.constant 0 : index
    %c0_8 = arith.constant 0 : index
    %11 = vector.load %arg7[%c0_7, %c0_8] : memref<16x64xbf16, #tpu.memory_space<vmem>>, vector<16x64xbf16>
    %cst_9 = arith.constant dense<0.000000e+00> : vector<8x64xf32>
    %12 = tpu.matmul %10, %11, %cst_9 {dimension_numbers = #tpu.dot_dimension_numbers<[1], [0], [0], [1], [0, 0, 1, 1], [], []>} : vector<8x16xbf16>, vector<16x64xbf16>, vector<8x64xf32> -> vector<8x64xf32>
    %c2 = arith.constant 2 : index
    %c0_10 = arith.constant 0 : index
    %13 = vector.load %arg8[%c2, %c0_10] : memref<3x64xf32, #tpu.memory_space<vmem>>, vector<1x64xf32>
    %14 = vector.broadcast %13 : vector<1x64xf32> to vector<8x64xf32>
    %15 = arith.addf %12, %14 : vector<8x64xf32>
    %16 = arith.truncf %15 : vector<8x64xf32> to vector<8x64xbf16>
    %c0_11 = arith.constant 0 : index
    %c0_12 = arith.constant 0 : index
    %c0_13 = arith.constant 0 : index
    %17 = vector.load %arg12[%c0_11, %c0_12, %c0_13] : memref<2x8x32xbf16, #tpu.memory_space<vmem>>, vector<1x8x32xbf16>
    %18 = vector.shape_cast %17 : vector<1x8x32xbf16> to vector<8x32xbf16>
    %19 = vector.extract_strided_slice %9 {offsets = [0, 0], sizes = [8, 32], strides = [1, 1]} : vector<8x64xbf16> to vector<8x32xbf16>
    %cst_14 = arith.constant dense<0.000000e+00> : vector<8x8xf32>
    %20 = tpu.matmul %18, %19, %cst_14 {dimension_numbers = #tpu.dot_dimension_numbers<[1], [1], [0], [0], [0, 0, 1, 0], [], []>} : vector<8x32xbf16>, vector<8x32xbf16>, vector<8x8xf32> -> vector<8x8xf32>
    %cst_15 = arith.constant 0.176776692 : f32
    %21 = vector.broadcast %cst_15 : f32 to vector<8x8xf32>
    %22 = arith.mulf %20, %21 : vector<8x8xf32>
    %c0_16 = arith.constant 0 : index
    %c0_17 = arith.constant 0 : index
    %c0_18 = arith.constant 0 : index
    %23 = vector.load %arg13[%c0_16, %c0_17, %c0_18] : memref<2x8x1xf32, #tpu.memory_space<vmem>>, vector<1x8x1xf32>
    %24 = vector.shape_cast %23 : vector<1x8x1xf32> to vector<8x1xf32>
    %cst_19 = arith.constant dense<0xFF800000> : vector<8xf32>
    %25 = vector.multi_reduction <maximumf>, %22, %cst_19 [1] : vector<8x8xf32> to vector<8xf32>
    %26 = vector.shape_cast %25 : vector<8xf32> to vector<8x1xf32>
    %27 = arith.maximumf %24, %26 : vector<8x1xf32>
    %28 = arith.subf %24, %27 : vector<8x1xf32>
    %29 = math.exp %28 : vector<8x1xf32>
    %30 = vector.broadcast %27 : vector<8x1xf32> to vector<8x8xf32>
    %31 = arith.subf %22, %30 : vector<8x8xf32>
    %32 = math.exp %31 : vector<8x8xf32>
    %c0_20 = arith.constant 0 : index
    %c0_21 = arith.constant 0 : index
    %c0_22 = arith.constant 0 : index
    %33 = vector.load %arg14[%c0_20, %c0_21, %c0_22] : memref<2x8x1xf32, #tpu.memory_space<vmem>>, vector<1x8x1xf32>
    %34 = vector.shape_cast %33 : vector<1x8x1xf32> to vector<8x1xf32>
    %35 = arith.mulf %29, %34 : vector<8x1xf32>
    %cst_23 = arith.constant dense<0.000000e+00> : vector<8xf32>
    %36 = vector.multi_reduction <add>, %32, %cst_23 [1] : vector<8x8xf32> to vector<8xf32>
    %37 = vector.shape_cast %36 : vector<8xf32> to vector<8x1xf32>
    %38 = arith.addf %35, %37 : vector<8x1xf32>
    %c0_24 = arith.constant 0 : index
    %c0_25 = arith.constant 0 : index
    %c0_26 = arith.constant 0 : index
    %39 = vector.load %arg14[%c0_24, %c0_25, %c0_26] : memref<2x8x1xf32, #tpu.memory_space<vmem>>, vector<1x8x1xf32>
    %40 = vector.shape_cast %39 : vector<1x8x1xf32> to vector<8x1xf32>
    %41 = vector.shape_cast %38 : vector<8x1xf32> to vector<1x8x1xf32>
    tpu.vector_store %arg14[%c0_24, %c0_25, %c0_26], %41 {strides = array<i32>} : memref<2x8x1xf32, #tpu.memory_space<vmem>>, vector<1x8x1xf32>,
    %c0_27 = arith.constant 0 : index
    %c0_28 = arith.constant 0 : index
    %c0_29 = arith.constant 0 : index
    %42 = vector.load %arg15[%c0_27, %c0_28, %c0_29] : memref<2x8x32xf32, #tpu.memory_space<vmem>>, vector<1x8x32xf32>
    %43 = vector.shape_cast %42 : vector<1x8x32xf32> to vector<8x32xf32>
    %44 = vector.broadcast %29 : vector<8x1xf32> to vector<8x32xf32>
    %45 = arith.mulf %44, %43 : vector<8x32xf32>
    %46 = arith.truncf %32 : vector<8x8xf32> to vector<8x8xbf16>
    %47 = vector.extract_strided_slice %16 {offsets = [0, 0], sizes = [8, 32], strides = [1, 1]} : vector<8x64xbf16> to vector<8x32xbf16>
    %cst_30 = arith.constant dense<0.000000e+00> : vector<8x32xf32>
    %48 = tpu.matmul %46, %47, %cst_30 {dimension_numbers = #tpu.dot_dimension_numbers<[1], [0], [0], [1], [0, 0, 1, 1], [], []>} : vector<8x8xbf16>, vector<8x32xbf16>, vector<8x32xf32> -> vector<8x32xf32>
    %49 = arith.addf %45, %48 : vector<8x32xf32>
    %c0_31 = arith.constant 0 : index
    %c0_32 = arith.constant 0 : index
    %c0_33 = arith.constant 0 : index
    %50 = vector.load %arg15[%c0_31, %c0_32, %c0_33] : memref<2x8x32xf32, #tpu.memory_space<vmem>>, vector<1x8x32xf32>
    %51 = vector.shape_cast %50 : vector<1x8x32xf32> to vector<8x32xf32>
    %52 = vector.shape_cast %49 : vector<8x32xf32> to vector<1x8x32xf32>
    tpu.vector_store %arg15[%c0_31, %c0_32, %c0_33], %52 {strides = array<i32>} : memref<2x8x32xf32, #tpu.memory_space<vmem>>, vector<1x8x32xf32>,
    %c0_34 = arith.constant 0 : index
    %c0_35 = arith.constant 0 : index
    %c0_36 = arith.constant 0 : index
    %53 = vector.load %arg13[%c0_34, %c0_35, %c0_36] : memref<2x8x1xf32, #tpu.memory_space<vmem>>, vector<1x8x1xf32>
    %54 = vector.shape_cast %53 : vector<1x8x1xf32> to vector<8x1xf32>
    %55 = vector.shape_cast %27 : vector<8x1xf32> to vector<1x8x1xf32>
    tpu.vector_store %arg13[%c0_34, %c0_35, %c0_36], %55 {strides = array<i32>} : memref<2x8x1xf32, #tpu.memory_space<vmem>>, vector<1x8x1xf32>,
    %c1_37 = arith.constant 1 : index
    %c0_38 = arith.constant 0 : index
    %c0_39 = arith.constant 0 : index
    %56 = vector.load %arg12[%c1_37, %c0_38, %c0_39] : memref<2x8x32xbf16, #tpu.memory_space<vmem>>, vector<1x8x32xbf16>
    %57 = vector.shape_cast %56 : vector<1x8x32xbf16> to vector<8x32xbf16>
    %58 = vector.extract_strided_slice %9 {offsets = [0, 32], sizes = [8, 32], strides = [1, 1]} : vector<8x64xbf16> to vector<8x32xbf16>
    %cst_40 = arith.constant dense<0.000000e+00> : vector<8x8xf32>
    %59 = tpu.matmul %57, %58, %cst_40 {dimension_numbers = #tpu.dot_dimension_numbers<[1], [1], [0], [0], [0, 0, 1, 0], [], []>} : vector<8x32xbf16>, vector<8x32xbf16>, vector<8x8xf32> -> vector<8x8xf32>
    %cst_41 = arith.constant 0.176776692 : f32
    %60 = vector.broadcast %cst_41 : f32 to vector<8x8xf32>
    %61 = arith.mulf %59, %60 : vector<8x8xf32>
    %c1_42 = arith.constant 1 : index
    %c0_43 = arith.constant 0 : index
    %c0_44 = arith.constant 0 : index
    %62 = vector.load %arg13[%c1_42, %c0_43, %c0_44] : memref<2x8x1xf32, #tpu.memory_space<vmem>>, vector<1x8x1xf32>
    %63 = vector.shape_cast %62 : vector<1x8x1xf32> to vector<8x1xf32>
    %cst_45 = arith.constant dense<0xFF800000> : vector<8xf32>
    %64 = vector.multi_reduction <maximumf>, %61, %cst_45 [1] : vector<8x8xf32> to vector<8xf32>
    %65 = vector.shape_cast %64 : vector<8xf32> to vector<8x1xf32>
    %66 = arith.maximumf %63, %65 : vector<8x1xf32>
    %67 = arith.subf %63, %66 : vector<8x1xf32>
    %68 = math.exp %67 : vector<8x1xf32>
    %69 = vector.broadcast %66 : vector<8x1xf32> to vector<8x8xf32>
    %70 = arith.subf %61, %69 : vector<8x8xf32>
    %71 = math.exp %70 : vector<8x8xf32>
    %c1_46 = arith.constant 1 : index
    %c0_47 = arith.constant 0 : index
    %c0_48 = arith.constant 0 : index
    %72 = vector.load %arg14[%c1_46, %c0_47, %c0_48] : memref<2x8x1xf32, #tpu.memory_space<vmem>>, vector<1x8x1xf32>
    %73 = vector.shape_cast %72 : vector<1x8x1xf32> to vector<8x1xf32>
    %74 = arith.mulf %68, %73 : vector<8x1xf32>
    %cst_49 = arith.constant dense<0.000000e+00> : vector<8xf32>
    %75 = vector.multi_reduction <add>, %71, %cst_49 [1] : vector<8x8xf32> to vector<8xf32>
    %76 = vector.shape_cast %75 : vector<8xf32> to vector<8x1xf32>
    %77 = arith.addf %74, %76 : vector<8x1xf32>
    %c1_50 = arith.constant 1 : index
    %c0_51 = arith.constant 0 : index
    %c0_52 = arith.constant 0 : index
    %78 = vector.load %arg14[%c1_50, %c0_51, %c0_52] : memref<2x8x1xf32, #tpu.memory_space<vmem>>, vector<1x8x1xf32>
    %79 = vector.shape_cast %78 : vector<1x8x1xf32> to vector<8x1xf32>
    %80 = vector.shape_cast %77 : vector<8x1xf32> to vector<1x8x1xf32>
    tpu.vector_store %arg14[%c1_50, %c0_51, %c0_52], %80 {strides = array<i32>} : memref<2x8x1xf32, #tpu.memory_space<vmem>>, vector<1x8x1xf32>,
    %c1_53 = arith.constant 1 : index
    %c0_54 = arith.constant 0 : index
    %c0_55 = arith.constant 0 : index
    %81 = vector.load %arg15[%c1_53, %c0_54, %c0_55] : memref<2x8x32xf32, #tpu.memory_space<vmem>>, vector<1x8x32xf32>
    %82 = vector.shape_cast %81 : vector<1x8x32xf32> to vector<8x32xf32>
    %83 = vector.broadcast %68 : vector<8x1xf32> to vector<8x32xf32>
    %84 = arith.mulf %83, %82 : vector<8x32xf32>
    %85 = arith.truncf %71 : vector<8x8xf32> to vector<8x8xbf16>
    %86 = vector.extract_strided_slice %16 {offsets = [0, 32], sizes = [8, 32], strides = [1, 1]} : vector<8x64xbf16> to vector<8x32xbf16>
    %cst_56 = arith.constant dense<0.000000e+00> : vector<8x32xf32>
    %87 = tpu.matmul %85, %86, %cst_56 {dimension_numbers = #tpu.dot_dimension_numbers<[1], [0], [0], [1], [0, 0, 1, 1], [], []>} : vector<8x8xbf16>, vector<8x32xbf16>, vector<8x32xf32> -> vector<8x32xf32>
    %88 = arith.addf %84, %87 : vector<8x32xf32>
    %c1_57 = arith.constant 1 : index
    %c0_58 = arith.constant 0 : index
    %c0_59 = arith.constant 0 : index
    %89 = vector.load %arg15[%c1_57, %c0_58, %c0_59] : memref<2x8x32xf32, #tpu.memory_space<vmem>>, vector<1x8x32xf32>
    %90 = vector.shape_cast %89 : vector<1x8x32xf32> to vector<8x32xf32>
    %91 = vector.shape_cast %88 : vector<8x32xf32> to vector<1x8x32xf32>
    tpu.vector_store %arg15[%c1_57, %c0_58, %c0_59], %91 {strides = array<i32>} : memref<2x8x32xf32, #tpu.memory_space<vmem>>, vector<1x8x32xf32>,
    %c1_60 = arith.constant 1 : index
    %c0_61 = arith.constant 0 : index
    %c0_62 = arith.constant 0 : index
    %92 = vector.load %arg13[%c1_60, %c0_61, %c0_62] : memref<2x8x1xf32, #tpu.memory_space<vmem>>, vector<1x8x1xf32>
    %93 = vector.shape_cast %92 : vector<1x8x1xf32> to vector<8x1xf32>
    %94 = vector.shape_cast %66 : vector<8x1xf32> to vector<1x8x1xf32>
    tpu.vector_store %arg13[%c1_60, %c0_61, %c0_62], %94 {strides = array<i32>} : memref<2x8x1xf32, #tpu.memory_space<vmem>>, vector<1x8x1xf32>,
    %c0_i32_63 = arith.constant 0 : i32
    %95 = arith.cmpi eq, %arg1, %c0_i32_63 : i32
    %96 = arith.extui %95 : i1 to i32
    %c0_i32_64 = arith.constant 0 : i32
    %97 = arith.cmpi ne, %96, %c0_i32_64 : i32
    scf.if %97 {
      %c0_65 = arith.constant 0 : index
      %c0_66 = arith.constant 0 : index
      %c0_67 = arith.constant 0 : index
      %98 = vector.load %arg14[%c0_65, %c0_66, %c0_67] : memref<2x8x1xf32, #tpu.memory_space<vmem>>, vector<1x8x1xf32>
      %99 = vector.shape_cast %98 : vector<1x8x1xf32> to vector<8x1xf32>
      %100 = tpu.reciprocal %99 {approx = true} : vector<8x1xf32> -> vector<8x1xf32>
      %c0_68 = arith.constant 0 : index
      %c0_69 = arith.constant 0 : index
      %c0_70 = arith.constant 0 : index
      %101 = vector.load %arg15[%c0_68, %c0_69, %c0_70] : memref<2x8x32xf32, #tpu.memory_space<vmem>>, vector<1x8x32xf32>
      %102 = vector.shape_cast %101 : vector<1x8x32xf32> to vector<8x32xf32>
      %103 = vector.broadcast %100 : vector<8x1xf32> to vector<8x32xf32>
      %104 = arith.mulf %102, %103 : vector<8x32xf32>
      %105 = arith.truncf %104 : vector<8x32xf32> to vector<8x32xbf16>
      %c1_71 = arith.constant 1 : index
      %c0_72 = arith.constant 0 : index
      %c0_73 = arith.constant 0 : index
      %106 = vector.load %arg14[%c1_71, %c0_72, %c0_73] : memref<2x8x1xf32, #tpu.memory_space<vmem>>, vector<1x8x1xf32>
      %107 = vector.shape_cast %106 : vector<1x8x1xf32> to vector<8x1xf32>
      %108 = tpu.reciprocal %107 {approx = true} : vector<8x1xf32> -> vector<8x1xf32>
      %c1_74 = arith.constant 1 : index
      %c0_75 = arith.constant 0 : index
      %c0_76 = arith.constant 0 : index
      %109 = vector.load %arg15[%c1_74, %c0_75, %c0_76] : memref<2x8x32xf32, #tpu.memory_space<vmem>>, vector<1x8x32xf32>
      %110 = vector.shape_cast %109 : vector<1x8x32xf32> to vector<8x32xf32>
      %111 = vector.broadcast %108 : vector<8x1xf32> to vector<8x32xf32>
      %112 = arith.mulf %110, %111 : vector<8x32xf32>
      %113 = arith.truncf %112 : vector<8x32xf32> to vector<8x32xbf16>
      %114 = tpu.concatenate %105, %113 in 1 : vector<8x32xbf16>, vector<8x32xbf16> -> vector<8x64xbf16>
      %c0_77 = arith.constant 0 : index
      %c0_78 = arith.constant 0 : index
      %115 = vector.load %arg9[%c0_77, %c0_78] : memref<64x32xbf16, #tpu.memory_space<vmem>>, vector<64x32xbf16>
      %cst_79 = arith.constant dense<0.000000e+00> : vector<8x32xf32>
      %116 = tpu.matmul %114, %115, %cst_79 {dimension_numbers = #tpu.dot_dimension_numbers<[1], [0], [0], [1], [0, 0, 1, 1], [], []>} : vector<8x64xbf16>, vector<64x32xbf16>, vector<8x32xf32> -> vector<8x32xf32>
      %c0_80 = arith.constant 0 : index
      %c0_81 = arith.constant 0 : index
      %117 = vector.load %arg10[%c0_80, %c0_81] : memref<1x32xf32, #tpu.memory_space<vmem>>, vector<1x32xf32>
      %118 = vector.broadcast %117 : vector<1x32xf32> to vector<8x32xf32>
      %119 = arith.addf %116, %118 : vector<8x32xf32>
      %c0_82 = arith.constant 0 : index
      %c0_83 = arith.constant 0 : index
      %120 = vector.load %arg11[%c0_82, %c0_83] : memref<8x32xf32, #tpu.memory_space<vmem>>, vector<8x32xf32>
      tpu.vector_store %arg11[%c0_82, %c0_83], %119 {strides = array<i32>} : memref<8x32xf32, #tpu.memory_space<vmem>>, vector<8x32xf32>,
    } else {
    }
    return
  }
  func.func @transform_0(%arg0: i32, %arg1: i32) -> (i32, i32) {
    %c0_i32 = arith.constant 0 : i32
    %c0_i32_0 = arith.constant 0 : i32
    return %arg0, %c0_i32 : i32, i32
  }
  func.func @transform_1(%arg0: i32, %arg1: i32) -> (i32, i32) {
    %c0_i32 = arith.constant 0 : i32
    %c0_i32_0 = arith.constant 0 : i32
    return %arg1, %c0_i32 : i32, i32
  }
  func.func @transform_2(%arg0: i32, %arg1: i32) -> (i32, i32) {
    %c0_i32 = arith.constant 0 : i32
    %c0_i32_0 = arith.constant 0 : i32
    return %arg1, %c0_i32 : i32, i32
  }
  func.func @transform_3(%arg0: i32, %arg1: i32) -> (i32, i32) {
    %c0_i32 = arith.constant 0 : i32
    %c0_i32_0 = arith.constant 0 : i32
    %c0_i32_1 = arith.constant 0 : i32
    return %c0_i32, %c0_i32_0 : i32, i32
  }
  func.func @transform_4(%arg0: i32, %arg1: i32) -> (i32, i32) {
    %c0_i32 = arith.constant 0 : i32
    %c0_i32_0 = arith.constant 0 : i32
    %c0_i32_1 = arith.constant 0 : i32
    return %c0_i32, %c0_i32_0 : i32, i32
  }
  func.func @transform_5(%arg0: i32, %arg1: i32) -> (i32, i32) {
    %c0_i32 = arith.constant 0 : i32
    %c0_i32_0 = arith.constant 0 : i32
    %c0_i32_1 = arith.constant 0 : i32
    return %c0_i32, %c0_i32_0 : i32, i32
  }
  func.func @transform_6(%arg0: i32, %arg1: i32) -> (i32, i32) {
    %c0_i32 = arith.constant 0 : i32
    %c0_i32_0 = arith.constant 0 : i32
    %c0_i32_1 = arith.constant 0 : i32
    return %c0_i32, %c0_i32_0 : i32, i32
  }
  func.func @transform_7(%arg0: i32, %arg1: i32) -> (i32, i32) {
    %c0_i32 = arith.constant 0 : i32
    %c0_i32_0 = arith.constant 0 : i32
    %c0_i32_1 = arith.constant 0 : i32
    return %c0_i32, %c0_i32_0 : i32, i32
  }
  func.func @transform_8(%arg0: i32, %arg1: i32) -> (i32, i32) {
    %c0_i32 = arith.constant 0 : i32
    %c0_i32_0 = arith.constant 0 : i32
    %c0_i32_1 = arith.constant 0 : i32
    return %c0_i32, %c0_i32_0 : i32, i32
  }
  func.func @transform_9(%arg0: i32, %arg1: i32) -> (i32, i32) {
    %c0_i32 = arith.constant 0 : i32
    %c0_i32_0 = arith.constant 0 : i32
    return %arg0, %c0_i32 : i32, i32
  }
}

</mosaic_0001>

<bundles_post_ra>
// kernel: tpu_custom_call.1
= control target key start
LH: loop header
LB: loop body
LE: loop exit
PB: predicated region body
PF: predicated region fallthrough
CT: control target
= control target key end

     0   :  { %v772_v1 = vmov 0.0   ;;  %vm773_vm0 = vmmov 0   ;;  %vm52_vm1 = vcmask 130048   ;;  %s939_s0 = inlined_call_operand.vmem [shape: bf16[8,16], index: 0, kind: input, shape index: {}]   ;;  %s940_s1 = inlined_call_operand.vmem [shape: bf16[8,16], index: 1, kind: input, shape index: {}]   ;;  %s941_s2 = inlined_call_operand.vmem [shape: bf16[8,16], index: 2, kind: input, shape index: {}]   ;;  %s942_s3 = inlined_call_operand.vmem [shape: bf16[16,64], index: 3, kind: input, shape index: {}]   ;;  %s943_s4 = inlined_call_operand.vmem [shape: bf16[16,64], index: 4, kind: input, shape index: {}]   ;;  %s944_s5 = inlined_call_operand.vmem [shape: bf16[16,64], index: 5, kind: input, shape index: {}]   ;;  %s945_s6 = inlined_call_operand.vmem [shape: f32[3,64], index: 6, kind: input, shape index: {}]   ;;  %s946_s7 = inlined_call_operand.vmem [shape: bf16[64,32], index: 7, kind: input, shape index: {}]   ;;  %s947_s8 = inlined_call_operand.vmem [shape: f32[1,32], index: 8, kind: input, shape index: {}]   ;;  %s948_s9 = inlined_call_operand.hbm [shape: f32[8,32], index: 9, kind: output, shape index: {}]  }
   0x1   :  { %v731_v0 = vld [vmem:[%s942_s3] sm:$0xff]   ;;  %668 = vmatprep.subr.bf16.mxu0 %v772_v1  ;;  %674 = vmatprep.subr.bf16.mxu1 %v772_v1 }
   0x2   :  { %v732_v2 = vld [vmem:[%s943_s4] sm:$0xff]   ;;  %669 = vmatpush3.bf16.msra.mxu0 %v731_v0  ;;  %670 = vmatprep.mubr.msk.bf16.mxu0 %vm773_vm0, %v772_v1 }
   0x3   :  { %v38_v3 = vld [vmem:[%s939_s0] sm:$0xf]  ;;  %675 = vmatpush3.bf16.msra.mxu1 %v732_v2  ;;  %676 = vmatprep.mubr.msk.bf16.mxu1 %vm773_vm0, %v772_v1 }
   0x4   :  { %v115_v4 = vld [vmem:[%s940_s1] sm:$0xf]  ;;  %686 = vmatprep.subr.bf16.mxu1 %v772_v1  ;;  %680 = vmatprep.subr.bf16.mxu0 %v772_v1 }
   0x5   :  { %671 = vmatmul.mubr.msk.bf16.vlgmr.msra.gmra.mxu0 %vm52_vm1, %v38_v3 }
   0x6   :  { %677 = vmatmul.mubr.msk.bf16.vlgmr.msra.gmra.mxu1 %vm52_vm1, %v115_v4  ;;  %682 = vmatprep.mubr.msk.bf16.mxu0 %vm773_vm0, %v772_v1 }
   0x7   :  { %14 = vsyncpa [#allocation7], 0  ;;  %688 = vmatprep.mubr.msk.bf16.mxu1 %vm773_vm0, %v772_v1  ;;  %vm112_vm2 = vcmask 261120   ;;  %v628_v5 = vld [vmem:[%s945_s6] ss:$0 sm:$0xff]  ;;  %vm97_vm3 = vcmask 257024  }
   0x8   :  { %113 = vst.msk [vmem:[#allocation5] sm:$0xff] %vm112_vm2, %v772_v1  ;;  %114 = vst.msk [vmem:[#allocation5 + $0x8] sm:$0xff] %vm112_vm2, %v772_v1  ;;  %v632_v6 = vld [vmem:[%s945_s6 + $0x1] ss:$0 sm:$0xff]  ;;  %s774_s17 = smov 96   ;;  %vm107_vm4 = vcmask 7168  }
   0x9   :  { %v733_v21 = vld [vmem:[%s944_s5] sm:$0xff]   ;;  %v775_v27 = vmov -1e+30   ;;  %110 = vst.msk [vmem:[#allocation4] sm:$0xff] %vm107_vm4, %v772_v1  ;;  %111 = vst.msk [vmem:[#allocation4 + $0x8] sm:$0xff] %vm107_vm4, %v772_v1  ;;  %vm282_vm5 = vcmask 64512  }
   0xa   :  { %681 = vmatpush3.bf16.msra.mxu0 %v733_v21  ;;  %v174_v22 = vld [vmem:[%s941_s2] sm:$0xf]  ;;  %108 = vst.msk [vmem:[#allocation3] sm:$0xff] %vm107_vm4, %v775_v27  ;;  %109 = vst.msk [vmem:[#allocation3 + $0x8] sm:$0xff] %vm107_vm4, %v775_v27  ;;  %v776_v34 = vmov 0   ;;  %vm317_vm6 = vcmask 1043456  }
   0xb   :  { %692 = vmatprep.subr.bf16.mxu0 %v772_v1  ;;  %729 = vset.pattern.permute.xlu0 %v776_v34  ;;  %v635_v45 = vld [vmem:[%s945_s6 + $0x2] ss:$0 sm:$0xff]  ;;  %s777_s29 = smov 32   ;;  %vm570_vm7 = vcmask 523264   ;;  %s778_s10 = smov [#allocation6]  }
   0xc   :  { %730 = vset.pattern.permute.xlu1 %v776_v34  ;;  %v735_v34 = vld [vmem:[%s946_s7 + $0x10] sm:$0xff]   ;;  %s620_s11 = sshll.u32 %s778_s10, 4  ;;  %s621_s11 = int_to_ptr.vmem [resolvable:$true] %s620_s11 }
   0xd   :  { %683 = vmatmul.mubr.msk.bf16.vlgmr.msra.gmra.mxu0 %vm52_vm1, %v174_v22  ;;  %s750_s12 = scalar_lea.vmem %s621_s11, 128  ;;  %p755_p1 = scmp.lt.s32.totalorder %s621_s11, %s621_s11 }
   0xe   :  { %694 = vmatprep.mubr.msk.bf16.mxu0 %vm773_vm0, %v772_v1  ;;  %p751_p0 = scmp.ne.s32.totalorder %s621_s11, %s750_s12  ;;  %p756_p2 = scmp.lt.s32.totalorder %s750_s12, %s750_s12 }
   0xf   :  { %v306_v27 = vld [vmem:[#allocation5] sm:$0xff] }
  0x10   :  { %v434_v22 = vld [vmem:[#allocation4 + $0x8] sm:$0xff]  ;;  %p757_p3 = por %p756_p2, %p755_p1 }
  0x11   :  { %v281_v41 = vld [vmem:[#allocation3] sm:$0xff]  ;;  %v417_v53 = vld [vmem:[#allocation3 + $0x8] sm:$0xff] }
  0x12   :  { %p758_p4 = pnand %p757_p3, %p751_p0 }
  0xc5   :  { %v90_v7 = vpop.f32.mrf.mxu0 }
  0xc6   :  { %v91_v8 = vadd.f32 %v628_v5, %v90_v7  ;;  %v167_v9 = vpop.f32.mrf.mxu1 }
  0xc7   :  { %v168_v10 = vadd.f32 %v632_v6, %v167_v9  ;;  %v672_v11 = vpop.f32.mrf.mxu0 }
  0xc8   :  { %v96_v12 = vpack.c.bf16 %v91_v8, %v91_v8  ;;  %v678_v13 = vpop.f32.mrf.mxu1 }
  0xc9   :  { %v173_v14 = vpack.c.bf16 %v168_v10, %v168_v10  ;;  %v93_v15 = vpop.f32.mrf.mxu0 }
  0xca   :  { %98 = vst.msk [vmem:[#allocation2] sm:$0xf] %vm97_vm3, %v96_v12  ;;  %v170_v16 = vpop.f32.mrf.mxu1  ;;  %102 = vrot.lane.b32.xlu0 %v96_v12, %s774_s17  ;;  %v298_v12 = vld [vmem:[#allocation4] sm:$0xff] }
  0xcb   :  { %v238_v17 = vsel %vm112_vm2, %v173_v14, 0  ;;  %v673_v18 = vpop.f32.mrf.mxu0 }
  0xcc   :  { %v679_v19 = vpop.f32.mrf.mxu1  ;;  %687 = vmatpush3.bf16.xpose.msra.mxu1 %v238_v17 }
  0xcd   :  { %698 = vmatprep.subr.bf16.mxu1 %v772_v1  ;;  %v225_v46 = vpop.f32.mrf.mxu0 }
  0xce   :  { %367 = vrot.lane.b32.xlu0 %v173_v14, %s774_s17  ;;  %v226_v47 = vadd.f32 %v635_v45, %v225_v46 }
  0xcf   :  { %v684_v48 = vpop.f32.mrf.mxu0 }
  0xd0   :  { %v231_v49 = vpack.c.bf16 %v226_v47, %v226_v47 }
  0xd1   :  { %v232_v20 = vld [vmem:[#allocation2] sm:$0xf]  ;;  %v228_v50 = vpop.f32.mrf.mxu0 }
  0xd2   :  { %v319_v51 = vsel %vm317_vm6, %v231_v49, 0 }
  0xd3   :  { %689 = vmatmul.mubr.msk.bf16.vlgmr.msra.gmra.mxu1 %vm112_vm2, %v232_v20  ;;  %693 = vmatpush3.bf16.msra.mxu0 %v319_v51  ;;  %v685_v52 = vpop.f32.mrf.mxu0 }
  0xd4   :  { %700 = vmatprep.mubr.msk.bf16.mxu1 %vm773_vm0, %v772_v1  ;;  %704 = vmatprep.subr.bf16.mxu0 %v772_v1 }
 0x13c   :  { %v103_v23 = vpop.permute.xlu0 %102 }
 0x13d   :  { %106 = vst.msk [vmem:[#allocation2 + $0x4] sm:$0xf] %vm97_vm3, %v103_v23 }
 0x140   :  { %v368_v24 = vpop.permute.xlu0 %367 }
 0x141   :  { %v373_v25 = vsel %vm112_vm2, %v368_v24, 0 }
 0x142   :  { %699 = vmatpush3.bf16.xpose.msra.mxu1 %v373_v25 }
 0x143   :  { %710 = vmatprep.subr.bf16.mxu1 %v772_v1 }
 0x144   :  { %v365_v26 = vld [vmem:[#allocation2 + $0x4] sm:$0xf] }
 0x149   :  { %701 = vmatmul.mubr.msk.bf16.vlgmr.msra.gmra.mxu1 %vm112_vm2, %v365_v26 }
 0x14a   :  { %718 = vmatprep.mubr.msk.bf16.mxu1 %vm773_vm0, %v772_v1 }
 0x193   :  { %v274_v28 = vpop.f32.mrf.mxu1 }
 0x194   :  { %v280_v29 = vmul.f32 0.17677669, %v274_v28 }
 0x195   :  { %v690_v30 = vpop.f32.mrf.mxu1 }
 0x196   :  { %v283_v31 = vsel %vm282_vm5, %v280_v29, -inf }
 0x197   :  { %284 = vmax.xlane.f32.xlu1 %v283_v31  ;;  %v277_v32 = vpop.f32.mrf.mxu1 }
 0x199   :  { %v691_v33 = vpop.f32.mrf.mxu1 }
 0x19a   :  { %v734_v33 = vld [vmem:[%s946_s7 + $0x18] sm:$0xff]  }
 0x19b   :  { %711 = vmatpush3.bf16.msra.mxu1 %v734_v33 }
 0x19c   :  { %712 = vmatprep.subr.bf16.mxu1 %v772_v1 }
 0x19f   :  { %713 = vmatpush3.bf16.msra.mxu1 %v735_v34 }
 0x1a0   :  { %714 = vmatprep.subr.bf16.mxu1 %v772_v1 }
 0x209   :  { %v409_v35 = vpop.f32.mrf.mxu1 }
 0x20a   :  { %v415_v36 = vmul.f32 0.17677669, %v409_v35  ;;  %v736_v35 = vld [vmem:[%s946_s7 + $0x8] sm:$0xff]  }
 0x20b   :  { %v702_v37 = vpop.f32.mrf.mxu1  ;;  %715 = vmatpush3.bf16.msra.mxu1 %v736_v35 }
 0x20c   :  { %v418_v38 = vsel %vm282_vm5, %v415_v36, -inf  ;;  %716 = vmatprep.subr.bf16.mxu1 %v772_v1  ;;  %v442_v37 = vld [vmem:[#allocation5 + $0x8] sm:$0xff] }
 0x20d   :  { %419 = vmax.xlane.f32.xlu1 %v418_v38  ;;  %v412_v39 = vpop.f32.mrf.mxu1 }
 0x20f   :  { %v703_v40 = vpop.f32.mrf.mxu1 }
 0x220   :  { %v285_v42 = vpop.xlane.xlu1 %284 }
 0x221   :  { %v286_v43 = vmax.f32 %v281_v41, %v285_v42 }
 0x223   :  { %v287_v44 = vsub.f32 %v281_v41, %v286_v43  ;;  %363 = vst.msk [vmem:[#allocation3] sm:$0xff] %vm107_vm4, %v286_v43  ;;  %292 = vperm.xlu0 %729, %v286_v43  }
 0x225   :  { %v288_v9 = vmul.f32 1.442695, %v287_v44 }
 0x227   :  { %451 = vrot.lane.b32.xlu0 %v231_v49, %s774_s17 }
 0x296   :  { %v420_v54 = vpop.xlane.xlu1 %419 }
 0x297   :  { %v421_v55 = vmax.f32 %v417_v53, %v420_v54 }
 0x299   :  { %v422_v56 = vsub.f32 %v417_v53, %v421_v55  ;;  %501 = vst.msk [vmem:[#allocation3 + $0x8] sm:$0xff] %vm107_vm4, %v421_v55  ;;  %427 = vperm.xlu1 %730, %v421_v55   ;;  %v642_v53 = vld [vmem:[%s947_s8] ss:$0 sm:$0xff] }
 0x29b   :  { %v423_v8 = vmul.f32 1.442695, %v422_v56 }
 0x29e   :  { %v293_v57 = vpop.permute.xlu0 %292 }
 0x29f   :  { %v295_v58 = vsub.f32 %v280_v29, %v293_v57 }
 0x2a1   :  { %v296_v59 = vmul.f32 1.442695, %v295_v58 }
 0x2a2   :  { %v452_v60 = vpop.permute.xlu0 %451 }
 0x2a3   :  { %738 = vpow2.f32 %v296_v59  ;;  %v457_v63 = vsel %vm317_vm6, %v452_v60, 0 }
 0x2b0   :  { %v739_v61 = vpop.eup %738 }
 0x2b1   :  { %v313_v62 = vpack.c.bf16 %v739_v61, %v739_v61  ;;  %v300_v0 = vsel %vm282_vm5, %v739_v61, 0.0 }
 0x2b3   :  { %695 = vmatmul.mubr.msk.bf16.vlgmr.msra.gmra.mxu0 %vm282_vm5, %v313_v62 }
 0x2b4   :  { %705 = vmatpush3.bf16.msra.mxu0 %v457_v63  ;;  %706 = vmatprep.mubr.msk.bf16.mxu0 %vm773_vm0, %v772_v1 }
 0x2bd   :  { %301 = vadd.xlane.f32.xlu1 %v300_v0 }
 0x314   :  { %v428_v2 = vpop.permute.xlu1 %427 }
 0x315   :  { %v430_v3 = vsub.f32 %v415_v36, %v428_v2  ;;  %v737_v36 = vld [vmem:[%s946_s7] sm:$0xff]  }
 0x316   :  { %717 = vmatpush3.bf16.msra.mxu1 %v737_v36 }
 0x317   :  { %v431_v4 = vmul.f32 1.442695, %v430_v3 }
 0x319   :  { %740 = vpow2.f32 %v431_v4 }
 0x31a   :  { %742 = vpow2.f32 %v423_v8 }
 0x31b   :  { %744 = vpow2.f32 %v288_v9 }
 0x326   :  { %v741_v5 = vpop.eup %740 }
 0x327   :  { %v436_v6 = vsel %vm282_vm5, %v741_v5, 0.0  ;;  %v449_v7 = vpack.c.bf16 %v741_v5, %v741_v5  ;;  %v743_v10 = vpop.eup %742 }
 0x328   :  { %437 = vadd.xlane.f32.xlu0 %v436_v6  ;;  %v745_v11 = vpop.eup %744  ;;  %v435_v23 = vmul.f32 %v743_v10, %v434_v22 }
 0x329   :  { %707 = vmatmul.mubr.msk.bf16.vlgmr.msra.gmra.mxu0 %vm282_vm5, %v449_v7  ;;  %v299_v13 = vmul.f32 %v745_v11, %v298_v12 }
 0x33e   :  { %445 = vperm.xlu0 %729, %v743_v10  }
 0x342   :  { %309 = vperm.xlu0 %729, %v745_v11  }
 0x346   :  { %v302_v14 = vpop.xlane.xlu1 %301 }
 0x347   :  { %v303_v15 = vadd.f32 %v302_v14, %v299_v13 }
 0x349   :  { %305 = vst.msk [vmem:[#allocation4] sm:$0xff] %vm107_vm4, %v303_v15 }
 0x350   :  { %v505_v16 = vld [vmem:[#allocation4] sm:$0xff] }
 0x351   :  { %746 = vrcp.f32 %v505_v16 }
 0x35e   :  { %v747_v17 = vpop.eup %746 }
 0x35f   :  { %510 = vperm.xlu0 %729, %v747_v17  }
 0x373   :  { %v355_v18 = vpop.f32.mrf.mxu0 }
 0x375   :  { %v696_v19 = vpop.f32.mrf.mxu0 }
 0x377   :  { %v358_v20 = vpop.f32.mrf.mxu0 }
 0x379   :  { %v697_v21 = vpop.f32.mrf.mxu0 }
 0x3b1   :  { %v438_v24 = vpop.xlane.xlu0 %437 }
 0x3b2   :  { %v439_v25 = vadd.f32 %v438_v24, %v435_v23 }
 0x3b4   :  { %440 = vst.msk [vmem:[#allocation4 + $0x8] sm:$0xff] %vm107_vm4, %v439_v25 }
 0x3b9   :  { %v446_v26 = vpop.permute.xlu0 %445 }
 0x3ba   :  { %v448_v38 = vmul.f32 %v446_v26, %v442_v37 }
 0x3bb   :  { %v515_v28 = vld [vmem:[#allocation4 + $0x8] sm:$0xff] }
 0x3bc   :  { %748 = vrcp.f32 %v515_v28 }
 0x3bd   :  { %v310_v29 = vpop.permute.xlu0 %309 }
 0x3be   :  { %v312_v30 = vmul.f32 %v310_v29, %v306_v27 }
 0x3c0   :  { %v361_v31 = vadd.f32 %v355_v18, %v312_v30 }
 0x3c2   :  { %362 = vst.msk [vmem:[#allocation5] sm:$0xff] %vm112_vm2, %v361_v31 }
 0x3c9   :  { %v749_v32 = vpop.eup %748  ;;  %v507_v49 = vld [vmem:[#allocation5] sm:$0xff] }
 0x3ca   :  { %520 = vperm.xlu1 %730, %v749_v32  }
 0x3da   :  { %v511_v48 = vpop.permute.xlu0 %510 }
 0x3db   :  { %v513_v50 = vmul.f32 %v511_v48, %v507_v49 }
 0x3dd   :  { %v514_v1 = vpack.c.bf16 %v513_v50, %v513_v50 }
 0x3e9   :  { %v493_v39 = vpop.f32.mrf.mxu0 }
 0x3ea   :  { %v499_v40 = vadd.f32 %v493_v39, %v448_v38 }
 0x3eb   :  { %v708_v41 = vpop.f32.mrf.mxu0 }
 0x3ec   :  { %500 = vst.msk [vmem:[#allocation5 + $0x8] sm:$0xff] %vm112_vm2, %v499_v40 }
 0x3ed   :  { %v496_v42 = vpop.f32.mrf.mxu0 }
 0x3ef   :  { %v709_v43 = vpop.f32.mrf.mxu0 }
 0x3f3   :  { %v517_v45 = vld [vmem:[#allocation5 + $0x8] sm:$0xff] }
 0x445   :  { %v521_v44 = vpop.permute.xlu1 %520 }
 0x446   :  { %v523_v46 = vmul.f32 %v521_v44, %v517_v45 }
 0x448   :  { %v524_v47 = vpack.c.bf16 %v523_v46, %v523_v46 }
 0x44a   :  { %526 = vrot.lane.b32.xlu1 %v524_v47, %s777_s29 }
 0x4bc   :  { %v527_v51 = vpop.permute.xlu1 %526 }
 0x4bd   :  { %v530_v52 = vsel %vm112_vm2, %v514_v1, %v527_v51 }
 0x4be   :  { %719 = vmatmul.mubr.msk.bf16.vlgmr.msra.gmra.mxu1 %vm570_vm7, %v530_v52 }
 0x57e   :  { %v607_v54 = vpop.f32.mrf.mxu1 }
 0x57f   :  { %v608_v55 = vadd.f32 %v642_v53, %v607_v54 }
 0x580   :  { %v720_v56 = vpop.f32.mrf.mxu1 }
 0x581   :  { %613 = vst.msk [vmem:[#allocation6] sm:$0xff] %vm112_vm2, %v608_v55 }
 0x582   :  { %v610_v57 = vpop.f32.mrf.mxu1 }
 0x583   :  { %761 = shalt.err (!%p758_p4)
}
 0x584   :  { %623 = dma.vmem_to_hbm [thread:$0]  %s621_s11, 128, %s948_s9, [#allocation7]   ;;  %v721_v58 = vpop.f32.mrf.mxu1 }
 0x585   :  { %770 = dma.done.wait [#allocation7], 128  }
 0x586   :  { %771 = vsyncadd [#allocation7], 4294967168 }
 0x587   :  { %627 = vsyncpa [#allocation7], 1 }

</bundles_post_ra>
